<compile_context>
chip_gen: v5e
topology: v5e:2x2
jax: 0.10.0
libtpu: 0.0.40
codegen_flags: <defaults>
</compile_context>

<pallas_src>
import jax
import jax.numpy as jnp
import numpy as np
from jax import lax
from jax.experimental import pallas as pl
from jax.experimental.pallas import tpu as pltpu

N_T = 3
TAU = 1.0 / (N_T - 1)


def landmark_deform_kernel(init_ref, mom_ref, mask_ref, nis_ref, out_ref):
    # init_ref: (BT, 2, N) coordinate-major initial landmarks (row 0 = x, row 1 = y)
    # mom_ref : (BT, N, 2) momentum in native layout (column slices are free)
    # mask_ref: (N, N) transposed same-curve mask, indexed [j, i]
    # nis_ref : (1, N) -1/sigmaV2, indexed by i along lanes
    # out_ref : (BT, 2, N) coordinate-major deformed landmarks
    mask_t = mask_ref[...]
    neg_inv_sig = nis_ref[...]

    # Momentum is fixed across both Euler steps; column (sublane) orientation.
    mom_x = mom_ref[:, :, 0:1]                  # (BT, N, 1)
    mom_y = mom_ref[:, :, 1:2]

    # Landmark positions in both orientations (row: i on lanes, col: j on sublanes).
    x_row = init_ref[:, 0:1, :]                 # (BT, 1, N)
    y_row = init_ref[:, 1:2, :]
    x_col = jnp.transpose(x_row, (0, 2, 1))     # (BT, N, 1)
    y_col = jnp.transpose(y_row, (0, 2, 1))

    def momentum_pull(x_col, y_col, x_row, y_row):
        # d[b, j, i] = ||p_j - p_i||^2, with i (the weight's "row" index) on lanes.
        dx = x_col - x_row                      # (BT, N, N)
        dy = y_col - y_row
        d = dx * dx + dy * dy
        # w[b, j, i] = mask[i, j] * exp(-d_ij / sigmaV2[i])
        # (mask is {0,1}, so mask*exp(-mask*d/sig) == mask*exp(-d/sig) exactly.)
        w = mask_t * jnp.exp(d * neg_inv_sig)
        # dp[b, i] = sum_j w[b, j, i] * momentum[b, j]: VPU multiply + XLU sublane
        # reduce; the result is already row-major (landmarks on lanes).
        dpx = jnp.sum(w * mom_x, axis=-2, keepdims=True)   # (BT, 1, N)
        dpy = jnp.sum(w * mom_y, axis=-2, keepdims=True)
        return dpx, dpy

    # Euler step 1 (both orientations of the deformed shape are needed for step 2).
    dpx, dpy = momentum_pull(x_col, y_col, x_row, y_row)
    x1_row = x_row + TAU * dpx
    y1_row = y_row + TAU * dpy
    x1_col = x_col + TAU * jnp.transpose(dpx, (0, 2, 1))
    y1_col = y_col + TAU * jnp.transpose(dpy, (0, 2, 1))

    # Euler step 2 (only the lane-major orientation is needed for the output).
    dpx, dpy = momentum_pull(x1_col, y1_col, x1_row, y1_row)
    out_x = x1_row + TAU * dpx                  # (BT, 1, N)
    out_y = y1_row + TAU * dpy

    # Single lane-dense store of the (BT, 2, N) result (one wide store instead of
    # two narrow per-coordinate stores — matters on v5e's single vst slot).
    bt, _, n = out_ref.shape
    coord = lax.broadcasted_iota(jnp.int32, (bt, 2, n), 1)
    out_ref[...] = jnp.where(coord == 0,
                             jnp.broadcast_to(out_x, (bt, 2, n)),
                             jnp.broadcast_to(out_y, (bt, 2, n)))


def landmark_deform(momentum, init_landmark, mask, sigmaV2, *, b_tile=None):
    """Two-step LDDMM Euler shooting. Returns (B, N, 2) deformed landmarks."""
    B, N, _ = momentum.shape
    if b_tile is None:
        # Fold as many batch elements per grid step as the (b_tile, N, N) f32
        # temporaries comfortably allow (a few MiB, safe even for v7x's smaller
        # VMEM), but keep >= 2 grid steps when B >= 2 so both v7x TensorCores get
        # a "parallel" slice of the batch.
        vmem_budget = 4 * 1024 * 1024
        max_bt = max(1, vmem_budget // (4 * N * N * 4))
        b_tile = int(max(1, min(pl.cdiv(B, 2), max_bt)))
    n_tiles = int(pl.cdiv(B, b_tile))
    b_pad = n_tiles * b_tile

    init_t = jnp.transpose(init_landmark.astype(jnp.float32), (0, 2, 1))   # (B, 2, N)
    mom = momentum.astype(jnp.float32)                                     # (B, N, 2)
    if b_pad != B:
        init_t = jnp.pad(init_t, ((0, b_pad - B), (0, 0), (0, 0)))
        mom = jnp.pad(mom, ((0, b_pad - B), (0, 0), (0, 0)))

    mask_t = jnp.transpose(mask.astype(jnp.float32))                       # (N, N), [j, i]
    neg_inv_sig = (-1.0 / sigmaV2.astype(jnp.float32)).reshape(1, N)       # (1, N)

    out_t = pl.pallas_call(
        landmark_deform_kernel,
        out_shape=jax.ShapeDtypeStruct((b_pad, 2, N), jnp.float32),
        grid=(n_tiles,),
        in_specs=[
            pl.BlockSpec((b_tile, 2, N), lambda b: (b, 0, 0)),   # init (coord-major)
            pl.BlockSpec((b_tile, N, 2), lambda b: (b, 0, 0)),   # momentum (native)
            pl.BlockSpec((N, N), lambda b: (0, 0)),              # mask^T (grid-invariant)
            pl.BlockSpec((1, N), lambda b: (0, 0)),              # -1/sigmaV2 (grid-invariant)
        ],
        out_specs=pl.BlockSpec((b_tile, 2, N), lambda b: (b, 0, 0)),
        compiler_params=pltpu.CompilerParams(dimension_semantics=("parallel",)),
    )(init_t, mom, mask_t, neg_inv_sig)

    return jnp.transpose(out_t[:B], (0, 2, 1))                             # (B, N, 2)


def reference(momentum, init_landmark, mask, sigmaV2):
    """Pure-JAX mirror of the PyTorch forward (for correctness checking)."""
    B, N, _ = momentum.shape
    m = mask[None, :, :, None]                     # (1, N, N, 1) ~ torch mask
    sig = sigmaV2.reshape(1, N, 1)                 # (1, N, 1)

    def step(x):
        xs = jnp.broadcast_to(x[:, None, :, :], (B, N, N, 2))          # x_j
        loc = jnp.broadcast_to(x[:, :, None, :], (B, N, N, 2))         # x_i
        d = jnp.sum((loc * m - xs * m) ** 2, axis=-1)                  # (B,N,N)
        w = jnp.exp(-d / sig)                                          # (B,N,N)
        mm = jnp.broadcast_to(momentum[:, None, :, :], (B, N, N, 2)) * m
        dp = jnp.sum(w[..., None] * mm, axis=-2)                       # (B,N,2)
        return x + TAU * dp

    return step(step(init_landmark))


if __name__ == "__main__":
    B = 2
    n_landmark = 16

    # Deterministic synthetic "config" parameters (get_sigmaV2 / get_curve2landmark).
    curve2landmark = {0: np.arange(0, 8), 1: np.arange(8, 16)}
    mask = np.zeros((n_landmark, n_landmark), np.float32)
    for _, v in curve2landmark.items():
        mask[np.ix_(v, v)] = 1.0
    sigmaV2 = (0.5 + 0.01 * np.arange(n_landmark, dtype=np.float32)).reshape(
        n_landmark, 1
    )

    key = jax.random.PRNGKey(0)
    k1, k2 = jax.random.split(key)
    momentum = 0.1 * jax.random.normal(k1, (B, n_landmark, 2), jnp.float32)
    init_landmark = jax.random.uniform(k2, (B, n_landmark, 2), jnp.float32)

    mask_j = jnp.asarray(mask)
    sig_j = jnp.asarray(sigmaV2)

    out = jax.block_until_ready(landmark_deform(momentum, init_landmark, mask_j, sig_j))
    ref = jax.block_until_ready(reference(momentum, init_landmark, mask_j, sig_j))
    np.testing.assert_allclose(np.asarray(out), np.asarray(ref), rtol=1e-5, atol=1e-5)

    print("KERNEL_OK")
</pallas_src>

<mosaic_0001>
module attributes {stable_mosaic.version = 11 : i64} {
  func.func @landmark_deform_kernel(%arg0: i32, %arg1: memref<1x2x16xf32, #tpu.memory_space<vmem>>, %arg2: memref<1x16x2xf32, #tpu.memory_space<vmem>>, %arg3: memref<16x16xf32, #tpu.memory_space<vmem>>, %arg4: memref<1x16xf32, #tpu.memory_space<vmem>>, %arg5: memref<1x2x16xf32, #tpu.memory_space<vmem>>) attributes {dimension_semantics = [#tpu.dimension_semantics<parallel>], iteration_bounds = array<i64: 2>, scalar_prefetch = 0 : i64, scratch_operands = 0 : i64, tpu.core_type = #tpu.core_type<tc>, window_params = [{transform_indices = @transform_0, window_bounds = array<i64: 1, 2, 16>}, {transform_indices = @transform_1, window_bounds = array<i64: 1, 16, 2>}, {pipeline_mode = #tpu.pipeline_mode<synchronous>, transform_indices = @transform_2, window_bounds = array<i64: 16, 16>}, {pipeline_mode = #tpu.pipeline_mode<synchronous>, transform_indices = @transform_3, window_bounds = array<i64: 1, 16>}, {transform_indices = @transform_4, window_bounds = array<i64: 1, 2, 16>}]} {
    %c0 = arith.constant 0 : index
    %c0_0 = arith.constant 0 : index
    %0 = vector.load %arg3[%c0, %c0_0] : memref<16x16xf32, #tpu.memory_space<vmem>>, vector<16x16xf32>
    %c0_1 = arith.constant 0 : index
    %c0_2 = arith.constant 0 : index
    %1 = vector.load %arg4[%c0_1, %c0_2] : memref<1x16xf32, #tpu.memory_space<vmem>>, vector<1x16xf32>
    %c0_3 = arith.constant 0 : index
    %c0_4 = arith.constant 0 : index
    %c0_5 = arith.constant 0 : index
    %2 = vector.load %arg2[%c0_3, %c0_4, %c0_5] : memref<1x16x2xf32, #tpu.memory_space<vmem>>, vector<1x16x1xf32>
    %c0_6 = arith.constant 0 : index
    %c0_7 = arith.constant 0 : index
    %c1 = arith.constant 1 : index
    %3 = vector.load %arg2[%c0_6, %c0_7, %c1] : memref<1x16x2xf32, #tpu.memory_space<vmem>>, vector<1x16x1xf32>
    %c0_8 = arith.constant 0 : index
    %c0_9 = arith.constant 0 : index
    %c0_10 = arith.constant 0 : index
    %4 = vector.load %arg1[%c0_8, %c0_9, %c0_10] : memref<1x2x16xf32, #tpu.memory_space<vmem>>, vector<1x1x16xf32>
    %c0_11 = arith.constant 0 : index
    %c1_12 = arith.constant 1 : index
    %c0_13 = arith.constant 0 : index
    %5 = vector.load %arg1[%c0_11, %c1_12, %c0_13] : memref<1x2x16xf32, #tpu.memory_space<vmem>>, vector<1x1x16xf32>
    %6 = tpu.transpose %4, [0, 2, 1] : vector<1x1x16xf32> -> vector<1x16x1xf32>
    %7 = tpu.transpose %5, [0, 2, 1] : vector<1x1x16xf32> -> vector<1x16x1xf32>
    %8 = vector.broadcast %6 : vector<1x16x1xf32> to vector<1x16x16xf32>
    %9 = vector.broadcast %4 : vector<1x1x16xf32> to vector<1x16x16xf32>
    %10 = arith.subf %8, %9 : vector<1x16x16xf32>
    %11 = vector.broadcast %7 : vector<1x16x1xf32> to vector<1x16x16xf32>
    %12 = vector.broadcast %5 : vector<1x1x16xf32> to vector<1x16x16xf32>
    %13 = arith.subf %11, %12 : vector<1x16x16xf32>
    %14 = arith.mulf %10, %10 : vector<1x16x16xf32>
    %15 = arith.mulf %13, %13 : vector<1x16x16xf32>
    %16 = arith.addf %14, %15 : vector<1x16x16xf32>
    %17 = vector.shape_cast %1 : vector<1x16xf32> to vector<1x1x16xf32>
    %18 = vector.broadcast %17 : vector<1x1x16xf32> to vector<1x16x16xf32>
    %19 = arith.mulf %16, %18 : vector<1x16x16xf32>
    %20 = math.exp %19 : vector<1x16x16xf32>
    %21 = vector.shape_cast %0 : vector<16x16xf32> to vector<1x16x16xf32>
    %22 = arith.mulf %21, %20 : vector<1x16x16xf32>
    %23 = vector.broadcast %2 : vector<1x16x1xf32> to vector<1x16x16xf32>
    %24 = arith.mulf %22, %23 : vector<1x16x16xf32>
    %cst = arith.constant dense<0.000000e+00> : vector<1x16xf32>
    %25 = vector.multi_reduction <add>, %24, %cst [1] : vector<1x16x16xf32> to vector<1x16xf32>
    %26 = vector.shape_cast %25 : vector<1x16xf32> to vector<1x1x16xf32>
    %27 = vector.broadcast %3 : vector<1x16x1xf32> to vector<1x16x16xf32>
    %28 = arith.mulf %22, %27 : vector<1x16x16xf32>
    %cst_14 = arith.constant dense<0.000000e+00> : vector<1x16xf32>
    %29 = vector.multi_reduction <add>, %28, %cst_14 [1] : vector<1x16x16xf32> to vector<1x16xf32>
    %30 = vector.shape_cast %29 : vector<1x16xf32> to vector<1x1x16xf32>
    %cst_15 = arith.constant 5.000000e-01 : f32
    %31 = vector.broadcast %cst_15 : f32 to vector<1x1x16xf32>
    %32 = arith.mulf %31, %26 : vector<1x1x16xf32>
    %33 = arith.addf %4, %32 : vector<1x1x16xf32>
    %cst_16 = arith.constant 5.000000e-01 : f32
    %34 = vector.broadcast %cst_16 : f32 to vector<1x1x16xf32>
    %35 = arith.mulf %34, %30 : vector<1x1x16xf32>
    %36 = arith.addf %5, %35 : vector<1x1x16xf32>
    %37 = tpu.transpose %26, [0, 2, 1] : vector<1x1x16xf32> -> vector<1x16x1xf32>
    %cst_17 = arith.constant 5.000000e-01 : f32
    %38 = vector.broadcast %cst_17 : f32 to vector<1x16x1xf32>
    %39 = arith.mulf %38, %37 : vector<1x16x1xf32>
    %40 = arith.addf %6, %39 : vector<1x16x1xf32>
    %41 = tpu.transpose %30, [0, 2, 1] : vector<1x1x16xf32> -> vector<1x16x1xf32>
    %cst_18 = arith.constant 5.000000e-01 : f32
    %42 = vector.broadcast %cst_18 : f32 to vector<1x16x1xf32>
    %43 = arith.mulf %42, %41 : vector<1x16x1xf32>
    %44 = arith.addf %7, %43 : vector<1x16x1xf32>
    %45 = vector.broadcast %40 : vector<1x16x1xf32> to vector<1x16x16xf32>
    %46 = vector.broadcast %33 : vector<1x1x16xf32> to vector<1x16x16xf32>
    %47 = arith.subf %45, %46 : vector<1x16x16xf32>
    %48 = vector.broadcast %44 : vector<1x16x1xf32> to vector<1x16x16xf32>
    %49 = vector.broadcast %36 : vector<1x1x16xf32> to vector<1x16x16xf32>
    %50 = arith.subf %48, %49 : vector<1x16x16xf32>
    %51 = arith.mulf %47, %47 : vector<1x16x16xf32>
    %52 = arith.mulf %50, %50 : vector<1x16x16xf32>
    %53 = arith.addf %51, %52 : vector<1x16x16xf32>
    %54 = vector.shape_cast %1 : vector<1x16xf32> to vector<1x1x16xf32>
    %55 = vector.broadcast %54 : vector<1x1x16xf32> to vector<1x16x16xf32>
    %56 = arith.mulf %53, %55 : vector<1x16x16xf32>
    %57 = math.exp %56 : vector<1x16x16xf32>
    %58 = vector.shape_cast %0 : vector<16x16xf32> to vector<1x16x16xf32>
    %59 = arith.mulf %58, %57 : vector<1x16x16xf32>
    %60 = vector.broadcast %2 : vector<1x16x1xf32> to vector<1x16x16xf32>
    %61 = arith.mulf %59, %60 : vector<1x16x16xf32>
    %cst_19 = arith.constant dense<0.000000e+00> : vector<1x16xf32>
    %62 = vector.multi_reduction <add>, %61, %cst_19 [1] : vector<1x16x16xf32> to vector<1x16xf32>
    %63 = vector.shape_cast %62 : vector<1x16xf32> to vector<1x1x16xf32>
    %64 = vector.broadcast %3 : vector<1x16x1xf32> to vector<1x16x16xf32>
    %65 = arith.mulf %59, %64 : vector<1x16x16xf32>
    %cst_20 = arith.constant dense<0.000000e+00> : vector<1x16xf32>
    %66 = vector.multi_reduction <add>, %65, %cst_20 [1] : vector<1x16x16xf32> to vector<1x16xf32>
    %67 = vector.shape_cast %66 : vector<1x16xf32> to vector<1x1x16xf32>
    %cst_21 = arith.constant 5.000000e-01 : f32
    %68 = vector.broadcast %cst_21 : f32 to vector<1x1x16xf32>
    %69 = arith.mulf %68, %63 : vector<1x1x16xf32>
    %70 = arith.addf %33, %69 : vector<1x1x16xf32>
    %cst_22 = arith.constant 5.000000e-01 : f32
    %71 = vector.broadcast %cst_22 : f32 to vector<1x1x16xf32>
    %72 = arith.mulf %71, %67 : vector<1x1x16xf32>
    %73 = arith.addf %36, %72 : vector<1x1x16xf32>
    %74 = tpu.iota {dimensions = array<i32: 1>} : vector<1x2x16xi32>
    %c0_i32 = arith.constant 0 : i32
    %75 = vector.broadcast %c0_i32 : i32 to vector<1x2x16xi32>
    %76 = arith.cmpi eq, %74, %75 : vector<1x2x16xi32>
    %77 = vector.shape_cast %70 : vector<1x1x16xf32> to vector<1x1x16xf32>
    %78 = vector.broadcast %77 : vector<1x1x16xf32> to vector<1x2x16xf32>
    %79 = vector.shape_cast %73 : vector<1x1x16xf32> to vector<1x1x16xf32>
    %80 = vector.broadcast %79 : vector<1x1x16xf32> to vector<1x2x16xf32>
    %81 = arith.select %76, %78, %80 : vector<1x2x16xi1>, vector<1x2x16xf32>
    %c0_23 = arith.constant 0 : index
    %c0_24 = arith.constant 0 : index
    %c0_25 = arith.constant 0 : index
    %82 = vector.load %arg5[%c0_23, %c0_24, %c0_25] : memref<1x2x16xf32, #tpu.memory_space<vmem>>, vector<1x2x16xf32>
    tpu.vector_store %arg5[%c0_23, %c0_24, %c0_25], %81 {strides = array<i32>} : memref<1x2x16xf32, #tpu.memory_space<vmem>>, vector<1x2x16xf32>,
    return
  }
  func.func @transform_0(%arg0: i32) -> (i32, i32, i32) {
    %c0_i32 = arith.constant 0 : i32
    %c0_i32_0 = arith.constant 0 : i32
    %c0_i32_1 = arith.constant 0 : i32
    return %arg0, %c0_i32, %c0_i32_0 : i32, i32, i32
  }
  func.func @transform_1(%arg0: i32) -> (i32, i32, i32) {
    %c0_i32 = arith.constant 0 : i32
    %c0_i32_0 = arith.constant 0 : i32
    %c0_i32_1 = arith.constant 0 : i32
    return %arg0, %c0_i32, %c0_i32_0 : i32, i32, i32
  }
  func.func @transform_2(%arg0: i32) -> (i32, i32) {
    %c0_i32 = arith.constant 0 : i32
    %c0_i32_0 = arith.constant 0 : i32
    %c0_i32_1 = arith.constant 0 : i32
    return %c0_i32, %c0_i32_0 : i32, i32
  }
  func.func @transform_3(%arg0: i32) -> (i32, i32) {
    %c0_i32 = arith.constant 0 : i32
    %c0_i32_0 = arith.constant 0 : i32
    %c0_i32_1 = arith.constant 0 : i32
    return %c0_i32, %c0_i32_0 : i32, i32
  }
  func.func @transform_4(%arg0: i32) -> (i32, i32, i32) {
    %c0_i32 = arith.constant 0 : i32
    %c0_i32_0 = arith.constant 0 : i32
    %c0_i32_1 = arith.constant 0 : i32
    return %arg0, %c0_i32, %c0_i32_0 : i32, i32, i32
  }
}

</mosaic_0001>

<bundles_post_ra>
// kernel: tpu_custom_call.1
= control target key start
LH: loop header
LB: loop body
LE: loop exit
PB: predicated region body
PF: predicated region fallthrough
CT: control target
= control target key end

     0   :  { %9 = vsyncpa [#allocation3], 0  ;;  %s927_s0 = inlined_call_operand.vmem [shape: f32[2,2,16], index: 0, kind: input, shape index: {}]   ;;  %s928_s1 = inlined_call_operand.vmem [shape: f32[2,16,2], index: 1, kind: input, shape index: {}]   ;;  %s929_s2 = inlined_call_operand.vmem [shape: f32[16,16], index: 2, kind: input, shape index: {}]   ;;  %s930_s3 = inlined_call_operand.vmem [shape: f32[1,16], index: 3, kind: input, shape index: {}]   ;;  %s931_s4 = inlined_call_operand.hbm [shape: f32[2,2,16], index: 4, kind: output, shape index: {}]  }
   0x1   :  { %11 = vsyncpa [#allocation3 + $0x1], 0  ;;  %s768_s15 = smov 0   ;;  %s770_s16 = smov 0  }
   0x2   :  { %s772_s17 = smov 0   ;;  %s774_s18 = smov 0  }
   0x3 LB: > { %s789_s19 = sadd.s32 4294967295, %s739_s18   ;;  %s605_s20 = sadd.s32 4294967294, %s739_s18   ;;  %s739_s18 = sphi %s774_s18, %s937_s18   ;;  %s735_s17 = sphi %s772_s17, %s936_s17   ;;  %s731_s16 = sphi %s770_s16, %s935_s16   ;;  %s727_s15 = sphi %s768_s15, %s934_s15  }
   0x4   : > { %s793_s21 = sadd.s32 1, %s739_s18   ;;  %s118_s22 = sadd.s32 1, %s735_s17 }
   0x5   : > { %s115_s23 = ssub.s32 %s739_s18, %s793_s21  ;;  %p128_p0 = scmp.ne.s32.totalorder %s735_s17, %s731_s16 }
   0x6   : > { %p116_p1 = scmp.eq.s32.totalorder %s115_s23, 0  ;;  %p129_p2 = scmp.eq.s32.totalorder %s789_s19, 1 }
   0x7   : > { %p134_p3 = scmp.ne.s32.totalorder %s731_s16, %s727_s15  ;;  %p135_p4 = scmp.eq.s32.totalorder %s605_s20, 1 }
   0x8   : > { %s804_s24 = scalar_select %p116_p1, %s735_s17, %s118_s22  }
   0x9   : > { %p806_p5 = por %p129_p2, %p128_p0  ;;  %p810_p6 = por %p135_p4, %p134_p3 }
   0xa   : > { %p608_p7 = scmp.ge.s32.totalorder %s739_s18, 1  ;;  %p174_p8 = scmp.lt.s32.totalorder %s739_s18, 3 }
   0xc   : > { %p175_p9 = pnand %p608_p7, %p174_p8 }
   0xd   : > { %p204_p10 = scmp.lt.s32.totalorder (!%p175_p9), %s789_s19, 1  ;;  %s201_s22 = sand.u32 (!%p175_p9), 1, %s731_s16  }
   0xe   : > { %178 = sbr.rel (%p175_p9) target bundleno = 686 (0x2ae), region = 36  ;;  %s609_s23 = sshll.u32 (!%p175_p9), %s201_s22, 1 }
   0xf   : > { %s203_s5 = scalar_lea.vmem (!%p175_p9), [#allocation2], %s609_s23  ;;  %s697_s12 = scalar_lea.hbm (!%p175_p9), %s931_s4, 4 }
  0x13   : > { %v741_v0 = vmov 0   ;;  %s205_s27 = scalar_select %p204_p10, %s789_s19, 1  ;;  %v742_v4 = vmov 1   ;;  %v851_v20 = vld [vmem:[%s930_s3] ss:$0 sm:$0xff]  ;;  %v864_v37 = vld [vmem:[%s929_s2 + $0x8] sm:$0xff] }
  0x14   : > { %660 = vset.pattern.permute.xlu1 %v741_v0  ;;  %661 = vset.pattern.permute.xlu2 %v741_v0  ;;  %v858_v35 = vld [vmem:[%s929_s2] sm:$0xff]  ;;  %vm339_vm0 = vcmask 130048   ;;  %vm516_vm2 = vcmask 123904  }
  0x15   : > { %s610_s28 = sshll.u32 %s205_s27, 1  ;;  %s617_s29 = sshll.u32 %s205_s27, 4 }
  0x16   : > { %s207_s6 = scalar_lea.vmem %s927_s0, %s610_s28  ;;  %s212_s9 = scalar_lea.vmem %s928_s1, %s617_s29 }
  0x17   : > { %v824_v1 = vld [vmem:[%s207_s6] sm:$0x1]  ;;  %v217_v3 = vld [vmem:[%s212_s9 + $0x8] sm:$0xff]  ;;  %v827_v5 = vld [vmem:[%s207_s6 + $0x1] sm:$0x1]  ;;  %s614_s27 = sshll.u32 %s789_s19, 1 }
  0x18   : > { %v216_v2 = vld [vmem:[%s212_s9] sm:$0xff]  ;;  %220 = vxpose.xlu0.b32.start.end [1/1] (short) (narrow) %v824_v1, 16  ;;  %334 = vperm.xlu2 %661, %v217_v3   ;;  %s529_s30 = scalar_lea.hbm %s931_s4, %s614_s27  ;;  %s519_s19 = scalar_lea.sflag [#allocation3], %s201_s22 }
  0x19   : > { %329 = vperm.xlu1 %660, %v216_v2   ;;  %v666_v14 = vld [vmem:[%s207_s6 + $0x1] ss:$0 sm:$0xff]  ;;  %v668_v15 = vld [vmem:[%s207_s6] ss:$0 sm:$0xff]  ;;  %s531_s6 = sshll.u32 %s203_s5, 4  ;;  %s533_s7 = sshll.u32 %s529_s30, 4  ;;  %s532_s6 = int_to_ptr.vmem [resolvable:$true] %s531_s6  ;;  %s534_s7 = int_to_ptr.hbm [resolvable:$true] %s533_s7 }
  0x1a   : > { %s691_s8 = sshra.s32 %s534_s7, 4  ;;  %s692_s8 = int_to_ptr.hbm [resolvable:$true] %s691_s8 }
  0x1b   : > { %s693_s9 = scalar_lea.hbm %s692_s8, 2  ;;  %p698_p0 = scmp.lt.s32.totalorder %s692_s8, %s931_s4 }
  0x1c   : > { %p694_p11 = scmp.ne.s32.totalorder %s692_s8, %s693_s9  ;;  %p699_p1 = scmp.lt.s32.totalorder %s697_s12, %s693_s9 }
  0x1e   : > { %p695_p12 = pnand %p694_p11, %p806_p5  ;;  %p700_p2 = por %p699_p1, %p698_p0 }
  0x20   : > { %p696_p13 = pneg %p695_p12 }
  0x21   : > { %663 = vset.pattern.permute.xlu1 %v742_v4 }
  0x22   : > { %354 = vperm.xlu1 %663, %v217_v3   ;;  %p701_p3 = pnand %p700_p2, %p696_p13 }
  0x28   : > { %252 = vxpose.xlu0.b32.start.end [1/1] (short) (narrow) %v827_v5, 16 }
  0x2a   : > { %664 = vset.pattern.permute.xlu1 %v741_v0 }
  0x72   : > { %v844_v11 = vpop.permute.xlu2 %334 }
  0x8b   : > { %v842_v10 = vpop.permute.xlu1 %329 }
  0x8f   : > { %662 = vset.pattern.permute.xlu0 %v742_v4 }
  0x94   : > { %v846_v12 = vpop.permute.xlu1 %354 }
  0x9e   : > { %350 = vperm.xlu0 %662, %v216_v2  }
  0xa6   : > { %665 = vset.pattern.permute.xlu0 %v741_v0 }
  0xbc   : > { %v830_v6 = vpop.trf.xlu0 }
  0xbd   : > { %286 = vperm.xlu1 %664, %v830_v6  }
  0xc4   : > { %v833_v7 = vpop.trf.xlu0 }
  0xc5   : > { %291 = vperm.xlu1 %664, %v833_v7  }
  0xcc   : > { %v836_v8 = vpop.trf.xlu0 }
  0xcd   : > { %299 = vperm.xlu2 %661, %v836_v8  }
  0xd4   : > { %v839_v9 = vpop.trf.xlu0 }
  0xd5   : > { %304 = vperm.xlu2 %661, %v839_v9  }
 0x110   : > { %v866_v38 = vpop.permute.xlu0 %350 }
 0x127   : > { %v300_v13 = vpop.permute.xlu2 %299 }
 0x128   : > { %v308_v16 = vsub.f32 %v300_v13, %v666_v14 }
 0x12a   : > { %v312_v19 = vmul.f32 %v308_v16, %v308_v16 }
 0x12f   : > { %v287_v17 = vpop.permute.xlu1 %286  ;;  %v305_v22 = vpop.permute.xlu2 %304 }
 0x130   : > { %v295_v18 = vsub.f32 %v287_v17, %v668_v15  ;;  %v309_v25 = vsub.f32 %v305_v22, %v666_v14 }
 0x132   : > { %v310_v21 = vmul.f32 %v295_v18, %v295_v18  ;;  %v313_v29 = vmul.f32 %v309_v25, %v309_v25 }
 0x134   : > { %v314_v23 = vadd.f32 %v312_v19, %v310_v21 }
 0x136   : > { %v319_v24 = vmul.f32 %v851_v20, %v314_v23 }
 0x137   : > { %v292_v26 = vpop.permute.xlu1 %291 }
 0x138   : > { %v321_v27 = vmul.f32 1.442695, %v319_v24  ;;  %v296_v28 = vsub.f32 %v292_v26, %v668_v15 }
 0x13a   : > { %v311_v30 = vmul.f32 %v296_v28, %v296_v28  ;;  %669 = vpow2.f32 %v321_v27 }
 0x13c   : > { %v315_v31 = vadd.f32 %v313_v29, %v311_v30 }
 0x13e   : > { %v320_v32 = vmul.f32 %v851_v20, %v315_v31 }
 0x140   : > { %v323_v33 = vmul.f32 1.442695, %v320_v32  ;;  %v670_v34 = vpop.eup %669 }
 0x141   : > { %v325_v36 = vmul.f32 %v670_v34, %v858_v35 }
 0x142   : > { %671 = vpow2.f32 %v323_v33 }
 0x143   : > { %v337_v41 = vmul.f32 %v842_v10, %v325_v36  ;;  %v357_v42 = vmul.f32 %v866_v38, %v325_v36 }
 0x145   : > { %v340_v45 = vsel %vm339_vm0, %v337_v41, 0.0  ;;  %v359_v47 = vsel %vm339_vm0, %v357_v42, 0.0 }
 0x148   : > { %v672_v39 = vpop.eup %671 }
 0x149   : > { %v326_v40 = vmul.f32 %v672_v39, %v864_v37 }
 0x14b   : > { %v338_v43 = vmul.f32 %v844_v11, %v326_v40  ;;  %v358_v44 = vmul.f32 %v846_v12, %v326_v40 }
 0x14d   : > { %v341_v46 = vsel %vm339_vm0, %v338_v43, 0.0  ;;  %v360_v48 = vsel %vm339_vm0, %v358_v44, 0.0 }
 0x14e   : > { %v342_v49 = vadd.f32 %v341_v46, %v340_v45  ;;  %v361_v50 = vadd.f32 %v360_v48, %v359_v47 }
 0x150   : > { %v362_v51 = vrot.slane %v361_v50, 4  ;;  %v343_v52 = vrot.slane %v342_v49, 4 }
 0x152   : > { %v363_v53 = vadd.f32 %v362_v51, %v361_v50  ;;  %v344_v54 = vadd.f32 %v343_v52, %v342_v49 }
 0x154   : > { %v364_v55 = vrot.slane %v363_v53, 2  ;;  %v345_v56 = vrot.slane %v344_v54, 2 }
 0x156   : > { %v365_v57 = vadd.f32 %v364_v55, %v363_v53  ;;  %v346_v58 = vadd.f32 %v345_v56, %v344_v54 }
 0x158   : > { %v366_v59 = vrot.slane %v365_v57, 1  ;;  %v347_v60 = vrot.slane %v346_v58, 1 }
 0x15a   : > { %v367_v61 = vadd.f32 %v366_v59, %v365_v57  ;;  %v348_v62 = vadd.f32 %v347_v60, %v346_v58  ;;  %v510_v57 = vlaneseq }
 0x15c   : > { %408 = vxpose.xlu1.b32.start.end [1/1] (short) (narrow) %v367_v61, 16  ;;  %372 = vxpose.xlu2.b32.start.end [1/1] (short) (narrow) %v348_v62, 16  ;;  %v368_v21 = vmul.f32 0.5, %v348_v62  ;;  %v370_v22 = vmul.f32 0.5, %v367_v61  ;;  %v511_v62 = vshrl.u32 %v510_v57, 7 }
 0x15e   : > { %v371_v23 = vadd.f32 %v370_v22, %v827_v5  ;;  %vm512_vm1 = vcmp.eq.s32.totalorder %v511_v62, 0 }
 0x160   : > { %v467_v26 = vperm.slane %v371_v23, 0 }
 0x1f5   : > { %v388_v63 = vpop.trf.xlu2 }
 0x1f6   : > { %v404_v0 = vmul.f32 0.5, %v388_v63 }
 0x1f8   : > { %v406_v2 = vadd.f32 %v404_v0, %v830_v6  ;;  %v369_v6 = vadd.f32 %v368_v21, %v824_v1 }
 0x1fa   : > { %446 = vperm.xlu2 %661, %v406_v2   ;;  %v454_v25 = vperm.slane %v369_v6, 0 }
 0x1fd   : > { %v389_v3 = vpop.trf.xlu2 }
 0x1fe   : > { %v405_v4 = vmul.f32 0.5, %v389_v3 }
 0x200   : > { %v407_v13 = vadd.f32 %v405_v4, %v833_v7  ;;  %v424_v14 = vpop.trf.xlu1 }
 0x201   : > { %v440_v15 = vmul.f32 0.5, %v424_v14 }
 0x202   : > { %451 = vperm.xlu1 %664, %v407_v13  }
 0x203   : > { %v442_v16 = vadd.f32 %v440_v15, %v836_v8 }
 0x205   : > { %459 = vperm.xlu0 %665, %v442_v16  }
 0x208   : > { %v425_v17 = vpop.trf.xlu1 }
 0x209   : > { %v441_v18 = vmul.f32 0.5, %v425_v17 }
 0x20b   : > { %v443_v19 = vadd.f32 %v441_v18, %v839_v9 }
 0x20d   : > { %464 = vperm.xlu0 %665, %v443_v19  }
 0x254   : > { %v447_v24 = vpop.permute.xlu2 %446 }
 0x255   : > { %v455_v7 = vsub.f32 %v447_v24, %v454_v25 }
 0x257   : > { %v470_v29 = vmul.f32 %v455_v7, %v455_v7 }
 0x274   : > { %v452_v30 = vpop.permute.xlu1 %451 }
 0x275   : > { %v456_v32 = vsub.f32 %v452_v30, %v454_v25 }
 0x277   : > { %v460_v27 = vpop.permute.xlu0 %459  ;;  %v471_v39 = vmul.f32 %v456_v32, %v456_v32 }
 0x278   : > { %v468_v28 = vsub.f32 %v460_v27, %v467_v26 }
 0x27a   : > { %v472_v8 = vmul.f32 %v468_v28, %v468_v28 }
 0x27c   : > { %v474_v31 = vadd.f32 %v472_v8, %v470_v29 }
 0x27e   : > { %v476_v9 = vmul.f32 %v851_v20, %v474_v31 }
 0x27f   : > { %v465_v33 = vpop.permute.xlu0 %464 }
 0x280   : > { %v478_v34 = vmul.f32 1.442695, %v476_v9  ;;  %v469_v36 = vsub.f32 %v465_v33, %v467_v26 }
 0x282   : > { %v473_v1 = vmul.f32 %v469_v36, %v469_v36  ;;  %673 = vpow2.f32 %v478_v34 }
 0x284   : > { %v475_v5 = vadd.f32 %v473_v1, %v471_v39 }
 0x286   : > { %v477_v40 = vmul.f32 %v851_v20, %v475_v5 }
 0x288   : > { %v480_v41 = vmul.f32 1.442695, %v477_v40  ;;  %v674_v42 = vpop.eup %673 }
 0x289   : > { %v482_v43 = vmul.f32 %v674_v42, %v858_v35 }
 0x28a   : > { %675 = vpow2.f32 %v480_v41 }
 0x28b   : > { %v484_v45 = vmul.f32 %v482_v43, %v842_v10  ;;  %v495_v46 = vmul.f32 %v482_v43, %v866_v38 }
 0x28d   : > { %v486_v50 = vsel %vm339_vm0, %v484_v45, 0.0  ;;  %v497_v20 = vsel %vm339_vm0, %v495_v46, 0.0 }
 0x290   : > { %v676_v44 = vpop.eup %675 }
 0x291   : > { %v483_v47 = vmul.f32 %v676_v44, %v864_v37 }
 0x293   : > { %v485_v48 = vmul.f32 %v483_v47, %v844_v11  ;;  %v496_v49 = vmul.f32 %v483_v47, %v846_v12 }
 0x295   : > { %v487_v51 = vsel %vm339_vm0, %v485_v48, 0.0  ;;  %v498_v35 = vsel %vm339_vm0, %v496_v49, 0.0 }
 0x296   : > { %v488_v52 = vadd.f32 %v487_v51, %v486_v50  ;;  %v499_v10 = vadd.f32 %v498_v35, %v497_v20 }
 0x298   : > { %v489_v53 = vrot.slane %v488_v52, 4  ;;  %v500_v38 = vrot.slane %v499_v10, 4 }
 0x29a   : > { %v490_v54 = vadd.f32 %v489_v53, %v488_v52  ;;  %v501_v55 = vadd.f32 %v500_v38, %v499_v10 }
 0x29c   : > { %v491_v37 = vrot.slane %v490_v54, 2  ;;  %v502_v56 = vrot.slane %v501_v55, 2 }
 0x29e   : > { %v492_v11 = vadd.f32 %v491_v37, %v490_v54  ;;  %v503_v12 = vadd.f32 %v502_v56, %v501_v55 }
 0x2a0   : > { %v493_v58 = vrot.slane %v492_v11, 1  ;;  %v504_v59 = vrot.slane %v503_v12, 1 }
 0x2a2   : > { %v494_v60 = vadd.f32 %v493_v58, %v492_v11  ;;  %v505_v61 = vadd.f32 %v504_v59, %v503_v12 }
 0x2a4   : > { %v506_v63 = vmul.f32 0.5, %v494_v60  ;;  %v508_v0 = vmul.f32 0.5, %v505_v61 }
 0x2a6   : > { %v507_v2 = vadd.f32 %v506_v63, %v369_v6  ;;  %v509_v3 = vadd.f32 %v508_v0, %v371_v23 }
 0x2a8   : > { %v513_v4 = vperm.slane %v507_v2, 0  ;;  %v514_v13 = vperm.slane %v509_v3, 0 }
 0x2aa   : > { %v515_v14 = vsel %vm512_vm1, %v513_v4, %v514_v13 }
 0x2ab   : > { %517 = vst.msk [vmem:[%s203_s5] sm:$0x3] %vm516_vm2, %v515_v14 }
 0x2ac   : > { %704 = shalt.err (!%p701_p3)
}
 0x2ad   : > { %618 = dma.vmem_to_hbm [thread:$0]  (%p806_p5), %s532_s6, 32, %s534_s7, %s519_s19  }
 0x2ae PF: > { %p624_p4 = scmp.ge.s32.totalorder %s739_s18, 2  ;;  %s545_s20 = sand.u32 1, %s727_s15  }
 0x2af   : > { %s546_s22 = scalar_lea.sflag [#allocation3], %s545_s20 }
 0x2b0   : > { %p621_p7 = pnand %p624_p4, %p810_p6 }
 0x2b2   : > { %p622_p8 = pneg %p621_p7 }
 0x2b4   : > { %722 = dma.done.wait (%p622_p8), %s546_s22, 32  }
 0x2b5   : > { %724 = vsyncadd (%p622_p8), %s546_s22, 4294967264  ;;  %p14_p9 = scmp.ge.s32.totalorder %s793_s21, 4   ;;  %s934_s15 = smov %s731_s16 }
 0x2b6   : > { %s935_s16 = smov %s735_s17  ;;  %s936_s17 = smov %s804_s24 }
 0x2b7   : > { %s937_s18 = smov %s793_s21  ;;  %16 = sbr.rel (!%p14_p9) target bundleno = 3 (0x3), region = 74 }
 0x2bc   :  { %552 = vsyncpa [#allocation3], 1 }
 0x2bd   :  { %554 = vsyncpa [#allocation3 + $0x1], 1 }

</bundles_post_ra>
